<compile_context>
chip_gen: v7x
topology: tpu7x:2x2x1
jax: 0.10.0
libtpu: 0.0.40
codegen_flags: <defaults>
</compile_context>

<pallas_src>
from functools import partial
from math import floor

import jax
import jax.numpy as jnp
import numpy as np
from jax.experimental import pallas as pl
from jax.experimental.pallas import tpu as pltpu


def _dropdepth_conv_kernel(x_ref, m_ref, w_ref, b_ref, o_ref, lhs_ref):
    """NB batch elements of  y = conv3x3(x * channel_mask) + bias  (scale pre-folded).

    x_ref   : (NB, H, W*Cin)      lane-folded NHWC input
    m_ref   : (NB, 1, W*Cin)      per-batch channel mask tiled across width
    w_ref   : (3*W*Cin, W*Cout)   banded conv weights (eval scale folded in)
    b_ref   : (1, W*Cout)         bias tiled across output width (scale folded in)
    o_ref   : (NB, H, W*Cout)     lane-dense output
    lhs_ref : (NB*H, 3*W*Cin)     VMEM scratch: im2col LHS (3 kh taps side by side)
    """
    NB, H, WCin = x_ref.shape
    WCout = o_ref.shape[2]

    zero_row = jnp.zeros((1, WCin), dtype=x_ref.dtype)
    for n in range(NB):                       # static, unrolled (NB is small)
        r0 = n * H
        # Mask applied once, on the input rows (not 3x on the LHS columns).
        xm = x_ref[n] * m_ref[n]              # (H, W*Cin)

        # kh=0 tap: output row h reads input row h-1; row 0 reads the zero pad.
        lhs_ref[pl.ds(r0, 1), pl.ds(0, WCin)] = zero_row
        lhs_ref[pl.ds(r0 + 1, H - 1), pl.ds(0, WCin)] = xm[:H - 1]
        # kh=1 tap (center): fully aligned store, no row shift.
        lhs_ref[pl.ds(r0, H), pl.ds(WCin, WCin)] = xm
        # kh=2 tap: output row h reads input row h+1; row H-1 reads the zero pad.
        lhs_ref[pl.ds(r0, H - 1), pl.ds(2 * WCin, WCin)] = xm[1:]
        lhs_ref[pl.ds(r0 + H - 1, 1), pl.ds(2 * WCin, WCin)] = zero_row

    # One MXU matmul for all NB*H output rows; result lands lane-dense.
    # TODO(synk): cast lhs/w to bfloat16 (keep f32 accumulate) at real sizes.
    acc = jnp.dot(lhs_ref[...], w_ref[...], preferred_element_type=jnp.float32)
    acc = acc + b_ref[...]
    o_ref[...] = acc.reshape(NB, H, WCout).astype(o_ref.dtype)


def prepare_banded_params(weight_hwio, bias, W, *, training, dtype=jnp.float32):
    """Build the width-banded conv weight and tiled bias (once per weight update).

    w_banded[(kh, wi, ci), (w, co)] = scale * weight[kh, wi - w + 1, ci, co]
    for 0 <= wi - w + 1 < 3, else 0.  Taps that would read the zero width-pad are
    dropped, so the kernel never needs width padding of the input.
    """
    KH, KW, Cin, Cout = weight_hwio.shape
    assert (KH, KW) == (3, 3)
    scale = 1.0 if training else 0.5          # eval: torch scales conv output by 0.5
    w = weight_hwio.astype(dtype) * scale
    # sel[kw, wi, wo] = 1  iff  wi == wo + kw - 1  (kw = wi - wo + 1 within the band)
    sel = (jnp.arange(W)[None, :, None]
           == jnp.arange(W)[None, None, :] + jnp.arange(3)[:, None, None] - 1
           ).astype(dtype)
    band = jnp.einsum("xqw,hxio->hqiwo", sel, w)          # (3, W, Cin, W, Cout)
    w_banded = band.reshape(3 * W * Cin, W * Cout)
    bias_tiled = jnp.tile(bias.astype(dtype) * scale, W).reshape(1, W * Cout)
    # TODO(synk): tile the output-width axis with a halo (Wt*Cout a multiple of
    # 128) instead of full-width replication once W grows: the banded weight is
    # O(W^2) and v7x's 64 MiB VMEM hits the limit first.
    return w_banded, bias_tiled


def _pick_batch_block(N, H):
    """How many batch elements to fold into the matmul M dimension per grid step."""
    nb = max(1, min(N, (256 + H - 1) // H))   # target >= 256 MXU rows, capped at N
    while N % nb:
        nb -= 1
    return nb


@jax.jit
def drop_depth_out_forward(x_nchw, mask_nc, w_banded, bias_tiled):
    """Pallas forward of DropDepthOut.

    x_nchw:     (N, Cin, H, W) float32  (PyTorch layout)
    mask_nc:    (N, Cin) 0/1 channel-dropout mask (all-ones for eval)
    w_banded:   (3*W*Cin, W*Cout)   from prepare_banded_params
    bias_tiled: (1, W*Cout)         from prepare_banded_params
    """
    N, Cin, H, W = x_nchw.shape
    K3, WCout = w_banded.shape
    WCin = W * Cin
    assert K3 == 3 * WCin
    Cout = WCout // W
    dtype = x_nchw.dtype

    # NCHW -> lane-folded NHWC (N, H, W*Cin); fuses with the kernel under this jit.
    x = jnp.transpose(x_nchw, (0, 2, 3, 1)).reshape(N, H, WCin)
    # Per-(batch, channel) mask tiled across width: lane w*Cin+ci <- mask[n, ci].
    mask_cols = jnp.tile(mask_nc.astype(dtype), (1, W)).reshape(N, 1, WCin)

    nb = _pick_batch_block(N, H)
    grid = (N // nb,)
    # TODO(synk): when grid == (1,) and N > 1 on v7x, split the batch into two
    # "parallel" steps so both TensorCores get work.

    out = pl.pallas_call(
        _dropdepth_conv_kernel,
        out_shape=jax.ShapeDtypeStruct((N, H, WCout), dtype),
        grid=grid,
        in_specs=[
            pl.BlockSpec((nb, H, WCin), lambda g: (g, 0, 0)),
            pl.BlockSpec((nb, 1, WCin), lambda g: (g, 0, 0)),
            # Constant index maps: the pipeline does not re-fetch these blocks
            # across grid steps.  TODO(synk): pin with pipeline_mode=pl.Buffered(1)
            # or a persistent VMEM scratch once a W-tiled weight block is sized
            # toward the VMEM limit (matters most on v7x's 64 MiB).
            pl.BlockSpec((K3, WCout), lambda g: (0, 0)),
            pl.BlockSpec((1, WCout), lambda g: (0, 0)),
        ],
        out_specs=pl.BlockSpec((nb, H, WCout), lambda g: (g, 0, 0)),
        scratch_shapes=[pltpu.VMEM((nb * H, K3), dtype)],
        compiler_params=pltpu.CompilerParams(
            dimension_semantics=("parallel",)),
    )(x, mask_cols, w_banded, bias_tiled)

    # (N, H, W*Cout) -> (N, Cout, H, W)
    return jnp.transpose(out.reshape(N, H, W, Cout), (0, 3, 1, 2))


def _reference_conv(x_nchw, weight_hwio, bias, mask_nc=None, training=False):
    """Pure-JAX reference (lax conv) for correctness checking."""
    x = jnp.transpose(x_nchw, (0, 2, 3, 1))
    if training:
        x = x * mask_nc.astype(x.dtype)[:, None, None, :]
    y = jax.lax.conv_general_dilated(
        x, weight_hwio, window_strides=(1, 1), padding="SAME",
        dimension_numbers=("NHWC", "HWIO", "NHWC"))
    y = y + bias[None, None, None, :]
    if not training:
        y = y * 0.5
    return jnp.transpose(y, (0, 3, 1, 2))


if __name__ == "__main__":
    # Module config: in_channel = 4, cfg[1] = out_channel = 8
    N, Cin, H, W = 2, 4, 16, 16
    Cout = 8
    dropout_ratio = 0.5

    key = jax.random.PRNGKey(0)
    kx, kw, kb, km = jax.random.split(key, 4)

    x = jax.random.normal(kx, (N, Cin, H, W), jnp.float32)
    # Deterministic parameter init (synthetic — not a checkpoint load).
    weight = jax.random.normal(kw, (3, 3, Cin, Cout), jnp.float32) * 0.1
    bias = jax.random.normal(kb, (Cout,), jnp.float32) * 0.1

    # ---- eval path: (conv(x) + b) * 0.5 ----
    w_eval, b_eval = prepare_banded_params(weight, bias, W, training=False)
    ones_mask = jnp.ones((N, Cin), jnp.float32)
    y_eval = drop_depth_out_forward(x, ones_mask, w_eval, b_eval)
    y_eval = jax.block_until_ready(y_eval)
    y_eval_ref = _reference_conv(x, weight, bias, training=False)
    np.testing.assert_allclose(np.asarray(y_eval), np.asarray(y_eval_ref),
                               rtol=1e-5, atol=1e-5)

    # ---- training path: conv(x * channel_mask) + b ----
    # Deterministic channel-dropout mask: floor(Cin * 0.5) channels zeroed per batch.
    # TODO(synk): torch uses host-side np.random.choice for the mask; generated
    # host-side here as well (not inside the kernel).
    n_drop = int(floor(Cin * dropout_ratio))
    mask_rows = []
    for i in range(N):
        perm = jax.random.permutation(jax.random.fold_in(km, i), Cin)
        row = jnp.ones((Cin,), jnp.float32).at[perm[:n_drop]].set(0.0)
        mask_rows.append(row)
    mask_nc = jnp.stack(mask_rows, axis=0)  # (N, Cin)

    w_train, b_train = prepare_banded_params(weight, bias, W, training=True)
    y_train = drop_depth_out_forward(x, mask_nc, w_train, b_train)
    y_train = jax.block_until_ready(y_train)
    y_train_ref = _reference_conv(x, weight, bias, mask_nc=mask_nc, training=True)
    np.testing.assert_allclose(np.asarray(y_train), np.asarray(y_train_ref),
                               rtol=1e-5, atol=1e-5)

    print("KERNEL_OK")
</pallas_src>

<mosaic_0001>
module attributes {stable_mosaic.version = 11 : i64} {
  func.func @_dropdepth_conv_kernel(%arg0: i32, %arg1: memref<2x16x64xf32, #tpu.memory_space<vmem>>, %arg2: memref<2x1x64xf32, #tpu.memory_space<vmem>>, %arg3: memref<192x128xf32, #tpu.memory_space<vmem>>, %arg4: memref<1x128xf32, #tpu.memory_space<vmem>>, %arg5: memref<2x16x128xf32, #tpu.memory_space<vmem>>, %arg6: memref<32x192xf32, #tpu.memory_space<vmem>>) attributes {dimension_semantics = [#tpu.dimension_semantics<parallel>], iteration_bounds = array<i64: 1>, scalar_prefetch = 0 : i64, scratch_operands = 1 : i64, tpu.core_type = #tpu.core_type<tc>, window_params = [{transform_indices = @transform_0, window_bounds = array<i64: 2, 16, 64>}, {transform_indices = @transform_1, window_bounds = array<i64: 2, 1, 64>}, {pipeline_mode = #tpu.pipeline_mode<synchronous>, transform_indices = @transform_2, window_bounds = array<i64: 192, 128>}, {pipeline_mode = #tpu.pipeline_mode<synchronous>, transform_indices = @transform_3, window_bounds = array<i64: 1, 128>}, {transform_indices = @transform_4, window_bounds = array<i64: 2, 16, 128>}]} {
    %cst = arith.constant 0.000000e+00 : f32
    %0 = vector.broadcast %cst : f32 to vector<1x64xf32>
    %c0 = arith.constant 0 : index
    %c0_0 = arith.constant 0 : index
    %c0_1 = arith.constant 0 : index
    %1 = vector.load %arg1[%c0, %c0_0, %c0_1] : memref<2x16x64xf32, #tpu.memory_space<vmem>>, vector<1x16x64xf32>
    %2 = vector.shape_cast %1 : vector<1x16x64xf32> to vector<16x64xf32>
    %c0_2 = arith.constant 0 : index
    %c0_3 = arith.constant 0 : index
    %c0_4 = arith.constant 0 : index
    %3 = vector.load %arg2[%c0_2, %c0_3, %c0_4] : memref<2x1x64xf32, #tpu.memory_space<vmem>>, vector<1x1x64xf32>
    %4 = vector.shape_cast %3 : vector<1x1x64xf32> to vector<1x64xf32>
    %5 = vector.broadcast %4 : vector<1x64xf32> to vector<16x64xf32>
    %6 = arith.mulf %2, %5 : vector<16x64xf32>
    %c0_5 = arith.constant 0 : index
    %c0_6 = arith.constant 0 : index
    %7 = vector.load %arg6[%c0_5, %c0_6] : memref<32x192xf32, #tpu.memory_space<vmem>>, vector<1x64xf32>
    tpu.vector_store %arg6[%c0_5, %c0_6], %0 {strides = array<i32>} : memref<32x192xf32, #tpu.memory_space<vmem>>, vector<1x64xf32>,
    %8 = vector.extract_strided_slice %6 {offsets = [0, 0], sizes = [15, 64], strides = [1, 1]} : vector<16x64xf32> to vector<15x64xf32>
    %c1 = arith.constant 1 : index
    %c0_7 = arith.constant 0 : index
    %9 = vector.load %arg6[%c1, %c0_7] : memref<32x192xf32, #tpu.memory_space<vmem>>, vector<15x64xf32>
    tpu.vector_store %arg6[%c1, %c0_7], %8 {strides = array<i32>} : memref<32x192xf32, #tpu.memory_space<vmem>>, vector<15x64xf32>,
    %c0_8 = arith.constant 0 : index
    %c64 = arith.constant 64 : index
    %10 = vector.load %arg6[%c0_8, %c64] : memref<32x192xf32, #tpu.memory_space<vmem>>, vector<16x64xf32>
    tpu.vector_store %arg6[%c0_8, %c64], %6 {strides = array<i32>} : memref<32x192xf32, #tpu.memory_space<vmem>>, vector<16x64xf32>,
    %11 = vector.extract_strided_slice %6 {offsets = [1, 0], sizes = [15, 64], strides = [1, 1]} : vector<16x64xf32> to vector<15x64xf32>
    %c0_9 = arith.constant 0 : index
    %c128 = arith.constant 128 : index
    %12 = vector.load %arg6[%c0_9, %c128] : memref<32x192xf32, #tpu.memory_space<vmem>>, vector<15x64xf32>
    tpu.vector_store %arg6[%c0_9, %c128], %11 {strides = array<i32>} : memref<32x192xf32, #tpu.memory_space<vmem>>, vector<15x64xf32>,
    %c15 = arith.constant 15 : index
    %c128_10 = arith.constant 128 : index
    %13 = vector.load %arg6[%c15, %c128_10] : memref<32x192xf32, #tpu.memory_space<vmem>>, vector<1x64xf32>
    tpu.vector_store %arg6[%c15, %c128_10], %0 {strides = array<i32>} : memref<32x192xf32, #tpu.memory_space<vmem>>, vector<1x64xf32>,
    %c1_11 = arith.constant 1 : index
    %c0_12 = arith.constant 0 : index
    %c0_13 = arith.constant 0 : index
    %14 = vector.load %arg1[%c1_11, %c0_12, %c0_13] : memref<2x16x64xf32, #tpu.memory_space<vmem>>, vector<1x16x64xf32>
    %15 = vector.shape_cast %14 : vector<1x16x64xf32> to vector<16x64xf32>
    %c1_14 = arith.constant 1 : index
    %c0_15 = arith.constant 0 : index
    %c0_16 = arith.constant 0 : index
    %16 = vector.load %arg2[%c1_14, %c0_15, %c0_16] : memref<2x1x64xf32, #tpu.memory_space<vmem>>, vector<1x1x64xf32>
    %17 = vector.shape_cast %16 : vector<1x1x64xf32> to vector<1x64xf32>
    %18 = vector.broadcast %17 : vector<1x64xf32> to vector<16x64xf32>
    %19 = arith.mulf %15, %18 : vector<16x64xf32>
    %c16 = arith.constant 16 : index
    %c0_17 = arith.constant 0 : index
    %20 = vector.load %arg6[%c16, %c0_17] : memref<32x192xf32, #tpu.memory_space<vmem>>, vector<1x64xf32>
    tpu.vector_store %arg6[%c16, %c0_17], %0 {strides = array<i32>} : memref<32x192xf32, #tpu.memory_space<vmem>>, vector<1x64xf32>,
    %21 = vector.extract_strided_slice %19 {offsets = [0, 0], sizes = [15, 64], strides = [1, 1]} : vector<16x64xf32> to vector<15x64xf32>
    %c17 = arith.constant 17 : index
    %c0_18 = arith.constant 0 : index
    %22 = vector.load %arg6[%c17, %c0_18] : memref<32x192xf32, #tpu.memory_space<vmem>>, vector<15x64xf32>
    tpu.vector_store %arg6[%c17, %c0_18], %21 {strides = array<i32>} : memref<32x192xf32, #tpu.memory_space<vmem>>, vector<15x64xf32>,
    %c16_19 = arith.constant 16 : index
    %c64_20 = arith.constant 64 : index
    %23 = vector.load %arg6[%c16_19, %c64_20] : memref<32x192xf32, #tpu.memory_space<vmem>>, vector<16x64xf32>
    tpu.vector_store %arg6[%c16_19, %c64_20], %19 {strides = array<i32>} : memref<32x192xf32, #tpu.memory_space<vmem>>, vector<16x64xf32>,
    %24 = vector.extract_strided_slice %19 {offsets = [1, 0], sizes = [15, 64], strides = [1, 1]} : vector<16x64xf32> to vector<15x64xf32>
    %c16_21 = arith.constant 16 : index
    %c128_22 = arith.constant 128 : index
    %25 = vector.load %arg6[%c16_21, %c128_22] : memref<32x192xf32, #tpu.memory_space<vmem>>, vector<15x64xf32>
    tpu.vector_store %arg6[%c16_21, %c128_22], %24 {strides = array<i32>} : memref<32x192xf32, #tpu.memory_space<vmem>>, vector<15x64xf32>,
    %c31 = arith.constant 31 : index
    %c128_23 = arith.constant 128 : index
    %26 = vector.load %arg6[%c31, %c128_23] : memref<32x192xf32, #tpu.memory_space<vmem>>, vector<1x64xf32>
    tpu.vector_store %arg6[%c31, %c128_23], %0 {strides = array<i32>} : memref<32x192xf32, #tpu.memory_space<vmem>>, vector<1x64xf32>,
    %c0_24 = arith.constant 0 : index
    %c0_25 = arith.constant 0 : index
    %27 = vector.load %arg6[%c0_24, %c0_25] : memref<32x192xf32, #tpu.memory_space<vmem>>, vector<32x192xf32>
    %c0_26 = arith.constant 0 : index
    %c0_27 = arith.constant 0 : index
    %28 = vector.load %arg3[%c0_26, %c0_27] : memref<192x128xf32, #tpu.memory_space<vmem>>, vector<192x128xf32>
    %cst_28 = arith.constant dense<0.000000e+00> : vector<32x128xf32>
    %29 = tpu.matmul %27, %28, %cst_28 {dimension_numbers = #tpu.dot_dimension_numbers<[1], [0], [0], [1], [0, 0, 1, 1], [], []>} : vector<32x192xf32>, vector<192x128xf32>, vector<32x128xf32> -> vector<32x128xf32>
    %c0_29 = arith.constant 0 : index
    %c0_30 = arith.constant 0 : index
    %30 = vector.load %arg4[%c0_29, %c0_30] : memref<1x128xf32, #tpu.memory_space<vmem>>, vector<1x128xf32>
    %31 = vector.broadcast %30 : vector<1x128xf32> to vector<32x128xf32>
    %32 = arith.addf %29, %31 : vector<32x128xf32>
    %33 = vector.shape_cast %32 : vector<32x128xf32> to vector<2x16x128xf32>
    %c0_31 = arith.constant 0 : index
    %c0_32 = arith.constant 0 : index
    %c0_33 = arith.constant 0 : index
    %34 = vector.load %arg5[%c0_31, %c0_32, %c0_33] : memref<2x16x128xf32, #tpu.memory_space<vmem>>, vector<2x16x128xf32>
    tpu.vector_store %arg5[%c0_31, %c0_32, %c0_33], %33 {strides = array<i32>} : memref<2x16x128xf32, #tpu.memory_space<vmem>>, vector<2x16x128xf32>,
    return
  }
  func.func @transform_0(%arg0: i32) -> (i32, i32, i32) {
    %c0_i32 = arith.constant 0 : i32
    %c0_i32_0 = arith.constant 0 : i32
    %c0_i32_1 = arith.constant 0 : i32
    return %arg0, %c0_i32, %c0_i32_0 : i32, i32, i32
  }
  func.func @transform_1(%arg0: i32) -> (i32, i32, i32) {
    %c0_i32 = arith.constant 0 : i32
    %c0_i32_0 = arith.constant 0 : i32
    %c0_i32_1 = arith.constant 0 : i32
    return %arg0, %c0_i32, %c0_i32_0 : i32, i32, i32
  }
  func.func @transform_2(%arg0: i32) -> (i32, i32) {
    %c0_i32 = arith.constant 0 : i32
    %c0_i32_0 = arith.constant 0 : i32
    %c0_i32_1 = arith.constant 0 : i32
    return %c0_i32, %c0_i32_0 : i32, i32
  }
  func.func @transform_3(%arg0: i32) -> (i32, i32) {
    %c0_i32 = arith.constant 0 : i32
    %c0_i32_0 = arith.constant 0 : i32
    %c0_i32_1 = arith.constant 0 : i32
    return %c0_i32, %c0_i32_0 : i32, i32
  }
  func.func @transform_4(%arg0: i32) -> (i32, i32, i32) {
    %c0_i32 = arith.constant 0 : i32
    %c0_i32_0 = arith.constant 0 : i32
    %c0_i32_1 = arith.constant 0 : i32
    return %arg0, %c0_i32, %c0_i32_0 : i32, i32, i32
  }
}

</mosaic_0001>

<bundles_post_ra>
// kernel: drop_depth_out_forward.1
= control target key start
LH: loop header
LB: loop body
LE: loop exit
PB: predicated region body
PF: predicated region fallthrough
CT: control target
= control target key end

     0   :  { %vm40_vm0 = vcmask 523264   ;;  %v317_v3 = vmov 0.0|0.0   ;;  %vm28_vm1 = vcmask 516096   ;;  %vm51_vm2 = vcmask 1046528   ;;  %s490_s0 = inlined_call_operand.vmem [shape: f32[2,16,64], index: 0, kind: input, shape index: {}]   ;;  %s491_s1 = inlined_call_operand.vmem [shape: f32[2,1,64], index: 1, kind: input, shape index: {}]   ;;  %s492_s2 = inlined_call_operand.vmem [shape: f32[192,128], index: 2, kind: input, shape index: {}]   ;;  %s493_s3 = inlined_call_operand.vmem [shape: f32[1,128], index: 3, kind: input, shape index: {}]   ;;  %s494_s4 = inlined_call_operand.vmem [shape: f32[2,16,128], index: 4, kind: output, shape index: {}]  }
   0x1   :  { %v17_v0 = vld [vmem:[%s490_s0] sm:$0xff]  ;;  %v18_v2 = vld [vmem:[%s490_s0 + $0x8] sm:$0xff]  ;;  %254 = vmatprep.subr.bf16.mxu0 %v317_v3  ;;  %290 = vmatprep.subr.bf16.mxu1 %v317_v3  ;;  %vm58_vm3 = vcmask 522240   ;;  %v245_v6 = vld [vmem:[%s490_s0 + $0x10] sm:$0xff]  ;;  %v318_v9 = vmov 0.0   ;;  %vm38_vm4 = vcmask 523265  }
   0x2   :  { %v244_v1 = vld [vmem:[%s491_s1] ss:$0 sm:$0xff]  ;;  %v248_v7 = vld [vmem:[%s491_s1 + $0x1] ss:$0 sm:$0xff]  ;;  %v246_v8 = vld [vmem:[%s490_s0 + $0x18] sm:$0xff]  ;;  %vm32_vm5 = vcmask 1040384  }
   0x3   :  { %v26_v4 = vmul.f32 %v244_v1, %v17_v0  ;;  %v27_v5 = vmul.f32 %v244_v1, %v18_v2  ;;  %29 = vst.msk [vmem:[#allocation2] sm:$0x1] %vm28_vm1, %v318_v9  ;;  %60 = vst.msk [vmem:[#allocation2 + $0x1f] sm:$0x1] %vm28_vm1, %v318_v9  ;;  %v72_v10 = vmul.f32 %v248_v7, %v245_v6  ;;  %v108_v12 = vld [vmem:[%s492_s2] sm:$0xff]  ;;  %v109_v13 = vld [vmem:[%s492_s2 + $0x8] sm:$0xff] }
   0x4   :  { %99 = vst.msk [vmem:[#allocation2 + $0x3f] sm:$0x1] %vm28_vm1, %v318_v9  ;;  %74 = vst.msk [vmem:[#allocation2 + $0x20] sm:$0x1] %vm28_vm1, %v318_v9  ;;  %v73_v11 = vmul.f32 %v248_v7, %v246_v8  ;;  %s319_s1 = smov 64   ;;  %v255_v23 = vpack.c.bf16 %v109_v13, %v108_v12  ;;  %v110_v24 = vld [vmem:[%s492_s2 + $0x10] sm:$0xff] }
   0x5   :  { %42 = vrot.lane.b32.xlu0 %v26_v4, %s319_s1  ;;  %v33_v14 = vrot.slane %v26_v4, 7  ;;  %v52_v15 = vrot.slane %v26_v4, 1  ;;  %44 = vrot.lane.b32.xlu1 %v27_v5, %s319_s1  ;;  %v34_v16 = vrot.slane %v27_v5, 7  ;;  %v53_v17 = vrot.slane %v27_v5, 1  ;;  %v111_v25 = vld [vmem:[%s492_s2 + $0x18] sm:$0xff]  ;;  %v112_v30 = vld [vmem:[%s492_s2 + $0x20] sm:$0xff] }
   0x6   :  { %v77_v18 = vrot.slane %v72_v10, 7  ;;  %v92_v19 = vrot.slane %v72_v10, 1  ;;  %v78_v20 = vrot.slane %v73_v11, 7  ;;  %v93_v21 = vrot.slane %v73_v11, 1  ;;  %256 = vmatpush1.bf16.msra.mxu0 %v255_v23  ;;  %302 = vmatpush1.bf16.msra.mxu1 %v255_v23  ;;  %v113_v31 = vld [vmem:[%s492_s2 + $0x28] sm:$0xff]  ;;  %v114_v33 = vld [vmem:[%s492_s2 + $0x30] sm:$0xff] }
   0x7   :  { %v54_v22 = vsel %vm51_vm2, %v52_v15, %v53_v17  ;;  %59 = vst.msk [vmem:[#allocation2 + $0x18] sm:$0x7f] %vm58_vm3, %v53_v17  ;;  %v35_v27 = vsel %vm32_vm5, %v33_v14, %v34_v16  ;;  %v258_v29 = vpack.c.bf16 %v111_v25, %v110_v24  ;;  %257 = vmatprep.subr.bf16.mxu0 %v317_v3  ;;  %v115_v34 = vld [vmem:[%s492_s2 + $0x38] sm:$0xff]  ;;  %v116_v38 = vld [vmem:[%s492_s2 + $0x40] sm:$0xff]  ;;  %v117_v39 = vld [vmem:[%s492_s2 + $0x48] sm:$0xff]  ;;  %vm48_vm6 = vcmask 1048064  }
   0x8   :  { %39 = vst.msk [vmem:[#allocation2] sm:$0xfe] %vm38_vm4, %v33_v14  ;;  %v94_v26 = vsel %vm51_vm2, %v92_v19, %v93_v21  ;;  %82 = vst.msk [vmem:[#allocation2 + $0x20] sm:$0xfe] %vm38_vm4, %v77_v18  ;;  %v79_v28 = vsel %vm32_vm5, %v77_v18, %v78_v20  ;;  %291 = vmatprep.subr.bf16.mxu1 %v317_v3  ;;  %v261_v32 = vpack.c.bf16 %v113_v31, %v112_v30  ;;  %v118_v41 = vld [vmem:[%s492_s2 + $0x50] sm:$0xff]  ;;  %v119_v42 = vld [vmem:[%s492_s2 + $0x58] sm:$0xff] }
   0x9   :  { %57 = vst.msk [vmem:[#allocation2 + $0x8] sm:$0xff] %vm40_vm0, %v54_v22  ;;  %84 = vrot.lane.b32.xlu0 %v72_v10, %s319_s1  ;;  %97 = vst.msk [vmem:[#allocation2 + $0x28] sm:$0xff] %vm40_vm0, %v94_v26  ;;  %86 = vrot.lane.b32.xlu1 %v73_v11, %s319_s1  ;;  %v264_v37 = vpack.c.bf16 %v115_v34, %v114_v33  ;;  %v267_v40 = vpack.c.bf16 %v117_v39, %v116_v38  ;;  %v120_v44 = vld [vmem:[%s492_s2 + $0x60] sm:$0xff]  ;;  %v121_v45 = vld [vmem:[%s492_s2 + $0x68] sm:$0xff] }
   0xa   :  { %98 = vst.msk [vmem:[#allocation2 + $0x38] sm:$0x7f] %vm58_vm3, %v93_v21  ;;  %259 = vmatpush1.bf16.msra.mxu0 %v258_v29  ;;  %303 = vmatpush1.bf16.msra.mxu1 %v258_v29  ;;  %v270_v43 = vpack.c.bf16 %v119_v42, %v118_v41  ;;  %v273_v46 = vpack.c.bf16 %v121_v45, %v120_v44  ;;  %v122_v47 = vld [vmem:[%s492_s2 + $0x70] sm:$0xff]  ;;  %v123_v48 = vld [vmem:[%s492_s2 + $0x78] sm:$0xff]  ;;  %v124_v50 = vld [vmem:[%s492_s2 + $0x80] sm:$0xff] }
   0xb   :  { %41 = vst.msk [vmem:[#allocation2 + $0x10] sm:$0xff] %vm40_vm0, %v35_v27  ;;  %83 = vst.msk [vmem:[#allocation2 + $0x30] sm:$0xff] %vm40_vm0, %v79_v28  ;;  %260 = vmatprep.subr.bf16.mxu0 %v317_v3  ;;  %292 = vmatprep.subr.bf16.mxu1 %v317_v3  ;;  %v276_v49 = vpack.c.bf16 %v123_v48, %v122_v47  ;;  %v125_v51 = vld [vmem:[%s492_s2 + $0x88] sm:$0xff]  ;;  %v126_v53 = vld [vmem:[%s492_s2 + $0x90] sm:$0xff] }
   0xc   :  { %v279_v52 = vpack.c.bf16 %v125_v51, %v124_v50  ;;  %v127_v54 = vld [vmem:[%s492_s2 + $0x98] sm:$0xff]  ;;  %v128_v56 = vld [vmem:[%s492_s2 + $0xa0] sm:$0xff]  ;;  %v129_v57 = vld [vmem:[%s492_s2 + $0xa8] sm:$0xff] }
   0xd   :  { %v282_v55 = vpack.c.bf16 %v127_v54, %v126_v53  ;;  %v285_v58 = vpack.c.bf16 %v129_v57, %v128_v56  ;;  %v130_v59 = vld [vmem:[%s492_s2 + $0xb0] sm:$0xff]  ;;  %v131_v60 = vld [vmem:[%s492_s2 + $0xb8] sm:$0xff]  ;;  %v249_v8 = vld [vmem:[%s493_s3] ss:$0 sm:$0xff] }
   0xe   :  { %262 = vmatpush1.bf16.msra.mxu0 %v261_v32  ;;  %304 = vmatpush1.bf16.msra.mxu1 %v261_v32  ;;  %v288_v61 = vpack.c.bf16 %v131_v60, %v130_v59  ;;  %v103_v2 = vld [vmem:[#allocation2 + $0x18] sm:$0xff] }
   0xf   :  { %263 = vmatprep.subr.bf16.mxu0 %v317_v3  ;;  %293 = vmatprep.subr.bf16.mxu1 %v317_v3 }
  0x10   :  { %v101_v35 = vld [vmem:[#allocation2 + $0x8] sm:$0xff] }
  0x11   :  { %250 = vmatprep.mubr.msk.f32.mxu0 %vm40_vm0, %v101_v35  ;;  %v105_v36 = vld [vmem:[#allocation2 + $0x28] sm:$0xff]  ;;  %v107_v6 = vld [vmem:[#allocation2 + $0x38] sm:$0xff] }
  0x12   :  { %252 = vmatprep.mubr.msk.f32.mxu1 %vm40_vm0, %v105_v36  ;;  %265 = vmatpush1.bf16.msra.mxu0 %v264_v37 }
  0x13   :  { %305 = vmatpush1.bf16.msra.mxu1 %v264_v37  ;;  %266 = vmatprep.subr.bf16.mxu0 %v317_v3 }
  0x14   :  { %294 = vmatprep.subr.bf16.mxu1 %v317_v3 }
  0x16   :  { %268 = vmatpush1.bf16.msra.mxu0 %v267_v40 }
  0x17   :  { %306 = vmatpush1.bf16.msra.mxu1 %v267_v40  ;;  %269 = vmatprep.subr.bf16.mxu0 %v317_v3 }
  0x18   :  { %295 = vmatprep.subr.bf16.mxu1 %v317_v3 }
  0x1a   :  { %271 = vmatpush1.bf16.msra.mxu0 %v270_v43 }
  0x1b   :  { %307 = vmatpush1.bf16.msra.mxu1 %v270_v43  ;;  %272 = vmatprep.subr.bf16.mxu0 %v317_v3 }
  0x1c   :  { %296 = vmatprep.subr.bf16.mxu1 %v317_v3 }
  0x1e   :  { %274 = vmatpush1.bf16.msra.mxu0 %v273_v46 }
  0x1f   :  { %308 = vmatpush1.bf16.msra.mxu1 %v273_v46  ;;  %275 = vmatprep.subr.bf16.mxu0 %v317_v3 }
  0x20   :  { %297 = vmatprep.subr.bf16.mxu1 %v317_v3 }
  0x22   :  { %277 = vmatpush1.bf16.msra.mxu0 %v276_v49 }
  0x23   :  { %309 = vmatpush1.bf16.msra.mxu1 %v276_v49  ;;  %278 = vmatprep.subr.bf16.mxu0 %v317_v3 }
  0x24   :  { %298 = vmatprep.subr.bf16.mxu1 %v317_v3 }
  0x26   :  { %280 = vmatpush1.bf16.msra.mxu0 %v279_v52 }
  0x27   :  { %310 = vmatpush1.bf16.msra.mxu1 %v279_v52  ;;  %281 = vmatprep.subr.bf16.mxu0 %v317_v3 }
  0x28   :  { %299 = vmatprep.subr.bf16.mxu1 %v317_v3 }
  0x2a   :  { %283 = vmatpush1.bf16.msra.mxu0 %v282_v55 }
  0x2b   :  { %311 = vmatpush1.bf16.msra.mxu1 %v282_v55  ;;  %284 = vmatprep.subr.bf16.mxu0 %v317_v3 }
  0x2c   :  { %300 = vmatprep.subr.bf16.mxu1 %v317_v3 }
  0x2e   :  { %286 = vmatpush1.bf16.msra.mxu0 %v285_v58 }
  0x2f   :  { %312 = vmatpush1.bf16.msra.mxu1 %v285_v58  ;;  %287 = vmatprep.subr.bf16.mxu0 %v317_v3 }
  0x30   :  { %301 = vmatprep.subr.bf16.mxu1 %v317_v3 }
  0x32   :  { %289 = vmatpush1.bf16.msra.mxu0 %v288_v61 }
  0x33   :  { %313 = vmatpush1.bf16.msra.mxu1 %v288_v61 }
  0x77   :  { %v43_v62 = vpop.permute.xlu0 %42  ;;  %v45_v63 = vpop.permute.xlu1 %44 }
  0x78   :  { %49 = vst.msk [vmem:[#allocation2] sm:$0xff] %vm48_vm6, %v43_v62  ;;  %50 = vst.msk [vmem:[#allocation2 + $0x10] sm:$0xff] %vm48_vm6, %v45_v63 }
  0x7b   :  { %v85_v0 = vpop.permute.xlu0 %84  ;;  %v87_v1 = vpop.permute.xlu1 %86 }
  0x7c   :  { %90 = vst.msk [vmem:[#allocation2 + $0x20] sm:$0xff] %vm48_vm6, %v85_v0  ;;  %91 = vst.msk [vmem:[#allocation2 + $0x30] sm:$0xff] %vm48_vm6, %v87_v1 }
  0x7f   :  { %v100_v4 = vld [vmem:[#allocation2] sm:$0xff]  ;;  %v102_v5 = vld [vmem:[#allocation2 + $0x10] sm:$0xff] }
  0x80   :  { %216 = vmatmul.mubr.f32.vlgmr.msra.gmra.mrb[0].mxu0 %v100_v4 }
  0x81   :  { %251 = vmatprep.mubr.msk.f32.mxu0 %vm40_vm0, %v103_v2 }
  0x83   :  { %v104_v7 = vld [vmem:[#allocation2 + $0x20] sm:$0xff]  ;;  %v106_v3 = vld [vmem:[#allocation2 + $0x30] sm:$0xff] }
  0x84   :  { %221 = vmatmul.mubr.f32.gmra.mrb[2].mxu0 %v102_v5  ;;  %226 = vmatmul.mubr.f32.vlgmr.msra.gmra.mrb[0].mxu1 %v104_v7 }
  0x85   :  { %253 = vmatprep.mubr.msk.f32.mxu1 %vm40_vm0, %v107_v6 }
  0x88   :  { %231 = vmatmul.mubr.f32.gmra.mrb[2].mxu1 %v106_v3 }
 0x153   :  { %v217_v9 = vpop.f32.mrb[0].mxu0 }
 0x154   :  { %v218_v10 = vadd.f32 %v249_v8, %v217_v9  ;;  %v219_v11 = vpop.f32.mrb[1].mxu0 }
 0x156   :  { %236 = vst [vmem:[%s494_s4] sm:$0xff] %v218_v10 }
 0x157   :  { %v222_v12 = vpop.f32.mrb[2].mxu0  ;;  %v227_v13 = vpop.f32.mrb[0].mxu1 }
 0x158   :  { %v223_v14 = vadd.f32 %v249_v8, %v222_v12  ;;  %v228_v15 = vadd.f32 %v249_v8, %v227_v13  ;;  %v224_v16 = vpop.f32.mrb[3].mxu0  ;;  %v229_v17 = vpop.f32.mrb[1].mxu1 }
 0x15a   :  { %237 = vst [vmem:[%s494_s4 + $0x8] sm:$0xff] %v223_v14  ;;  %238 = vst [vmem:[%s494_s4 + $0x10] sm:$0xff] %v228_v15 }
 0x15b   :  { %v232_v18 = vpop.f32.mrb[2].mxu1 }
 0x15c   :  { %v233_v19 = vadd.f32 %v249_v8, %v232_v18  ;;  %v234_v20 = vpop.f32.mrb[3].mxu1 }
 0x15e   :  { %239 = vst [vmem:[%s494_s4 + $0x18] sm:$0xff] %v233_v19 }

</bundles_post_ra>
